<compile_context>
chip_gen: v7x
topology: tpu7x:2x2x1
jax: 0.10.0
libtpu: 0.0.40
codegen_flags: <defaults>
</compile_context>

<pallas_src>
import jax
import jax.numpy as jnp
from jax.experimental import pallas as pl
from jax.experimental.pallas import tpu as pltpu


def _round_up(x, m):
    return ((x + m - 1) // m) * m


def _cdiv(a, b):
    return (a + b - 1) // b


def _block_diag(w, pack):
    """kron(I_pack, w): `pack` independent copies of w on the diagonal."""
    if pack == 1:
        return w
    return jnp.kron(jnp.eye(pack, dtype=w.dtype), w)


def preprocess_kernel(x_ref, w1_ref, b1_ref, w2_ref, b2_ref, o_ref):
    mxu_dt = w1_ref.dtype            # weights pre-stored in the MXU input dtype
    # fc1 + ReLU: MXU matmul with f32 accumulation, bias/ReLU on the VPU.
    t = jnp.dot(x_ref[...].astype(mxu_dt), w1_ref[...],
                preferred_element_type=jnp.float32)
    t = jnp.maximum(t + b1_ref[...], 0.0)          # b1 stored f32
    # fc2 + ReLU: the activation stays f32 between the layers; only the MXU
    # operand is cast, accumulation is f32 again.
    t = jnp.dot(t.astype(mxu_dt), w2_ref[...],
                preferred_element_type=jnp.float32)
    t = jnp.maximum(t + b2_ref[...], 0.0)
    o_ref[...] = t.astype(o_ref.dtype)              # lane-dense (128-wide) store


def _choose_tile_rows(rows, req_rows):
    """Pick the batch tile in packed-row units (always a multiple of 8)."""
    t = max(8, min(_round_up(req_rows, 8), _round_up(rows, 8)))
    steps = _cdiv(rows, t)
    if steps == 1 and rows >= 16:
        # v7x megacore: at least two parallel grid steps when the batch allows.
        t = _round_up(_cdiv(rows, 2), 8)
    elif steps >= 3 and steps % 2 == 1:
        # Prefer an even grid-step count so the two TensorCores stay balanced.
        t = _round_up(_cdiv(rows, steps + 1), 8)
    return t


def _build_call(*, rows, tile_rows, in_p, h_p, x_dtype, mxu_dtype, out_dtype):
    grid = (_cdiv(rows, tile_rows),)     # partial final block handled by masking
    in_specs = [
        pl.BlockSpec((tile_rows, in_p), lambda i: (i, 0)),   # x batch tile
        pl.BlockSpec((in_p, h_p), lambda i: (0, 0)),         # W1 (resident)
        pl.BlockSpec((1, h_p), lambda i: (0, 0)),            # b1
        pl.BlockSpec((h_p, h_p), lambda i: (0, 0)),          # W2 (resident)
        pl.BlockSpec((1, h_p), lambda i: (0, 0)),            # b2
    ]
    # Explicit VMEM limit only when a large user tile could approach v5e's
    # 16 MiB default scoped limit; the default tile (~7 MiB) needs none.
    x_bytes = tile_rows * in_p * jnp.dtype(x_dtype).itemsize
    o_bytes = tile_rows * h_p * jnp.dtype(out_dtype).itemsize
    w_bytes = (in_p * h_p + h_p * h_p) * jnp.dtype(mxu_dtype).itemsize + 2 * h_p * 4
    need = 2 * (x_bytes + o_bytes) + w_bytes + (2 << 20)
    cp_kwargs = dict(dimension_semantics=("parallel",))
    if need > (12 << 20):
        cp_kwargs["vmem_limit_bytes"] = int(need + (8 << 20))
    return pl.pallas_call(
        preprocess_kernel,
        out_shape=jax.ShapeDtypeStruct((rows, h_p), out_dtype),
        grid_spec=pltpu.PrefetchScalarGridSpec(
            num_scalar_prefetch=0,
            grid=grid,
            in_specs=in_specs,
            out_specs=pl.BlockSpec((tile_rows, h_p), lambda i: (i, 0)),
        ),
        compiler_params=pltpu.CompilerParams(**cp_kwargs),
    )


def make_preprocess(w1, b1, w2, b2, *, tile_b=8192, mxu_dtype=jnp.bfloat16,
                    out_dtype=None):
    """Pack the parameters once and return a jitted `x -> PreProcess(x)`.

    w1: [input_size, H], w2: [H, H] (transposed vs. torch.nn.Linear),
    b1/b2: [H] or [1, H].  `mxu_dtype` is the matmul-input dtype (bf16 keeps
    the kernel HBM-bound on v5e/v7x; accumulation is always f32).  `tile_b`
    is the batch tile in original rows.
    """
    w1 = jnp.asarray(w1, jnp.float32)
    w2 = jnp.asarray(w2, jnp.float32)
    in_size, H = w1.shape
    b1 = jnp.asarray(b1, jnp.float32).reshape(1, H)
    b2 = jnp.asarray(b2, jnp.float32).reshape(1, H)

    # Lane-dense packing factor: fold `pack` batch rows into one kernel row so
    # each output row is a full 128 lanes (H = 64 -> pack = 2).
    pack = 128 // H if (H < 128 and 128 % H == 0) else 1
    in_p, h_p = in_size * pack, H * pack
    align = 8 * pack       # original-row granularity keeping packed rows 8-aligned

    # Packed parameters: computed exactly once, captured as constants below.
    w1_p = _block_diag(w1, pack).astype(mxu_dtype)
    w2_p = _block_diag(w2, pack).astype(mxu_dtype)
    b1_p = jnp.tile(b1, (1, pack))      # stays f32: added post-accumulation
    b2_p = jnp.tile(b2, (1, pack))

    @jax.jit
    def preprocess_fn(x):
        B = x.shape[0]
        odt = out_dtype if out_dtype is not None else x.dtype
        # Pad only to the alignment (not up to a full tile); the partial final
        # grid block is masked on write, which is exact (rows are independent).
        b_pad = _round_up(B, align)
        x_a = jnp.pad(x, ((0, b_pad - B), (0, 0))) if b_pad != B else x
        x_pk = x_a.reshape(b_pad // pack, in_p)          # free row-major repack

        rows = b_pad // pack
        tile_rows = _choose_tile_rows(rows, max(tile_b, align) // pack)
        call = _build_call(rows=rows, tile_rows=tile_rows, in_p=in_p, h_p=h_p,
                           x_dtype=x.dtype, mxu_dtype=mxu_dtype, out_dtype=odt)
        out_p = call(x_pk, w1_p, b1_p, w2_p, b2_p)
        return out_p.reshape(b_pad, H)[:B]               # undo packing, drop pad

    return preprocess_fn


def preprocess(x, w1, b1, w2, b2, **kwargs):
    """One-shot convenience wrapper (re-packs the parameters on every call)."""
    return make_preprocess(w1, b1, w2, b2, **kwargs)(x)


def preprocess_ref(x, w1, b1, w2, b2):
    t = jnp.maximum(x @ w1 + jnp.reshape(b1, (1, -1)), 0.0)
    return jnp.maximum(t @ w2 + jnp.reshape(b2, (1, -1)), 0.0)


if __name__ == "__main__":
    # Small shapes consistent with the module: batch=8 "graph vectors",
    # input_size=32, processed_x_size=64.
    B, INPUT_SIZE, PROCESSED = 8, 32, 64

    key = jax.random.PRNGKey(0)
    kx, kw1, kb1, kw2, kb2 = jax.random.split(key, 5)

    x = jax.random.normal(kx, (B, INPUT_SIZE), dtype=jnp.float32)
    # Deterministic synthetic parameters (nn.Linear shapes, stored transposed).
    w1 = jax.random.normal(kw1, (INPUT_SIZE, PROCESSED), dtype=jnp.float32) * 0.1
    b1 = jax.random.normal(kb1, (1, PROCESSED), dtype=jnp.float32) * 0.1
    w2 = jax.random.normal(kw2, (PROCESSED, PROCESSED), dtype=jnp.float32) * 0.1
    b2 = jax.random.normal(kb2, (1, PROCESSED), dtype=jnp.float32) * 0.1

    ref = preprocess_ref(x, w1, b1, w2, b2)

    # Exact-f32 MXU path: tight check against the f32 reference.
    fn_f32 = make_preprocess(w1, b1, w2, b2, mxu_dtype=jnp.float32)
    out_f32 = jax.block_until_ready(fn_f32(x))
    assert out_f32.shape == (B, PROCESSED)
    assert jnp.allclose(out_f32, ref, atol=1e-5, rtol=1e-5), "f32 path mismatch"

    # Default bf16-MXU / f32-accumulate path (per perf review for v5e/v7x):
    # results match the reference at ~bf16 precision.
    fn_bf16 = make_preprocess(w1, b1, w2, b2)          # mxu_dtype=jnp.bfloat16
    out_bf16 = jax.block_until_ready(fn_bf16(x))
    assert out_bf16.shape == (B, PROCESSED)
    assert jnp.allclose(out_bf16, ref, atol=2e-2, rtol=2e-2), "bf16 path mismatch"

    # Ragged batch: alignment-only padding, >=2 parallel grid steps and a
    # masked partial final block.
    B2 = 1000
    x2 = jax.random.normal(kx, (B2, INPUT_SIZE), dtype=jnp.float32)
    out2 = jax.block_until_ready(fn_f32(x2))
    ref2 = preprocess_ref(x2, w1, b1, w2, b2)
    assert out2.shape == (B2, PROCESSED)
    assert jnp.allclose(out2, ref2, atol=1e-4, rtol=1e-4), \
        "mismatch vs reference (ragged batch)"

    print("KERNEL_OK")
</pallas_src>

<mosaic_0001>
module attributes {stable_mosaic.version = 11 : i64} {
  func.func @preprocess_kernel(%arg0: i32, %arg1: memref<8x64xf32, #tpu.memory_space<vmem>>, %arg2: memref<64x128xf32, #tpu.memory_space<vmem>>, %arg3: memref<1x128xf32, #tpu.memory_space<vmem>>, %arg4: memref<128x128xf32, #tpu.memory_space<vmem>>, %arg5: memref<1x128xf32, #tpu.memory_space<vmem>>, %arg6: memref<8x128xf32, #tpu.memory_space<vmem>>) attributes {dimension_semantics = [#tpu.dimension_semantics<parallel>], iteration_bounds = array<i64: 1>, scalar_prefetch = 0 : i64, scratch_operands = 0 : i64, tpu.core_type = #tpu.core_type<tc>, window_params = [{transform_indices = @transform_0, window_bounds = array<i64: 8, 64>}, {pipeline_mode = #tpu.pipeline_mode<synchronous>, transform_indices = @transform_1, window_bounds = array<i64: 64, 128>}, {pipeline_mode = #tpu.pipeline_mode<synchronous>, transform_indices = @transform_2, window_bounds = array<i64: 1, 128>}, {pipeline_mode = #tpu.pipeline_mode<synchronous>, transform_indices = @transform_3, window_bounds = array<i64: 128, 128>}, {pipeline_mode = #tpu.pipeline_mode<synchronous>, transform_indices = @transform_4, window_bounds = array<i64: 1, 128>}, {transform_indices = @transform_5, window_bounds = array<i64: 8, 128>}]} {
    %c0 = arith.constant 0 : index
    %c0_0 = arith.constant 0 : index
    %0 = vector.load %arg1[%c0, %c0_0] : memref<8x64xf32, #tpu.memory_space<vmem>>, vector<8x64xf32>
    %c0_1 = arith.constant 0 : index
    %c0_2 = arith.constant 0 : index
    %1 = vector.load %arg2[%c0_1, %c0_2] : memref<64x128xf32, #tpu.memory_space<vmem>>, vector<64x128xf32>
    %cst = arith.constant dense<0.000000e+00> : vector<8x128xf32>
    %2 = tpu.matmul %0, %1, %cst {dimension_numbers = #tpu.dot_dimension_numbers<[1], [0], [0], [1], [0, 0, 1, 1], [], []>} : vector<8x64xf32>, vector<64x128xf32>, vector<8x128xf32> -> vector<8x128xf32>
    %c0_3 = arith.constant 0 : index
    %c0_4 = arith.constant 0 : index
    %3 = vector.load %arg3[%c0_3, %c0_4] : memref<1x128xf32, #tpu.memory_space<vmem>>, vector<1x128xf32>
    %4 = vector.broadcast %3 : vector<1x128xf32> to vector<8x128xf32>
    %5 = arith.addf %2, %4 : vector<8x128xf32>
    %cst_5 = arith.constant 0.000000e+00 : f32
    %6 = vector.broadcast %cst_5 : f32 to vector<8x128xf32>
    %7 = arith.maximumf %5, %6 : vector<8x128xf32>
    %c0_6 = arith.constant 0 : index
    %c0_7 = arith.constant 0 : index
    %8 = vector.load %arg4[%c0_6, %c0_7] : memref<128x128xf32, #tpu.memory_space<vmem>>, vector<128x128xf32>
    %cst_8 = arith.constant dense<0.000000e+00> : vector<8x128xf32>
    %9 = tpu.matmul %7, %8, %cst_8 {dimension_numbers = #tpu.dot_dimension_numbers<[1], [0], [0], [1], [0, 0, 1, 1], [], []>} : vector<8x128xf32>, vector<128x128xf32>, vector<8x128xf32> -> vector<8x128xf32>
    %c0_9 = arith.constant 0 : index
    %c0_10 = arith.constant 0 : index
    %10 = vector.load %arg5[%c0_9, %c0_10] : memref<1x128xf32, #tpu.memory_space<vmem>>, vector<1x128xf32>
    %11 = vector.broadcast %10 : vector<1x128xf32> to vector<8x128xf32>
    %12 = arith.addf %9, %11 : vector<8x128xf32>
    %cst_11 = arith.constant 0.000000e+00 : f32
    %13 = vector.broadcast %cst_11 : f32 to vector<8x128xf32>
    %14 = arith.maximumf %12, %13 : vector<8x128xf32>
    %c0_12 = arith.constant 0 : index
    %c0_13 = arith.constant 0 : index
    %15 = vector.load %arg6[%c0_12, %c0_13] : memref<8x128xf32, #tpu.memory_space<vmem>>, vector<8x128xf32>
    tpu.vector_store %arg6[%c0_12, %c0_13], %14 {strides = array<i32>} : memref<8x128xf32, #tpu.memory_space<vmem>>, vector<8x128xf32>,
    return
  }
  func.func @transform_0(%arg0: i32) -> (i32, i32) {
    %c0_i32 = arith.constant 0 : i32
    %c0_i32_0 = arith.constant 0 : i32
    return %arg0, %c0_i32 : i32, i32
  }
  func.func @transform_1(%arg0: i32) -> (i32, i32) {
    %c0_i32 = arith.constant 0 : i32
    %c0_i32_0 = arith.constant 0 : i32
    %c0_i32_1 = arith.constant 0 : i32
    return %c0_i32, %c0_i32_0 : i32, i32
  }
  func.func @transform_2(%arg0: i32) -> (i32, i32) {
    %c0_i32 = arith.constant 0 : i32
    %c0_i32_0 = arith.constant 0 : i32
    %c0_i32_1 = arith.constant 0 : i32
    return %c0_i32, %c0_i32_0 : i32, i32
  }
  func.func @transform_3(%arg0: i32) -> (i32, i32) {
    %c0_i32 = arith.constant 0 : i32
    %c0_i32_0 = arith.constant 0 : i32
    %c0_i32_1 = arith.constant 0 : i32
    return %c0_i32, %c0_i32_0 : i32, i32
  }
  func.func @transform_4(%arg0: i32) -> (i32, i32) {
    %c0_i32 = arith.constant 0 : i32
    %c0_i32_0 = arith.constant 0 : i32
    %c0_i32_1 = arith.constant 0 : i32
    return %c0_i32, %c0_i32_0 : i32, i32
  }
  func.func @transform_5(%arg0: i32) -> (i32, i32) {
    %c0_i32 = arith.constant 0 : i32
    %c0_i32_0 = arith.constant 0 : i32
    return %arg0, %c0_i32 : i32, i32
  }
}

</mosaic_0001>

<bundles_post_ra>
// kernel: preprocess_fn.1
= control target key start
LH: loop header
LB: loop body
LE: loop exit
PB: predicated region body
PF: predicated region fallthrough
CT: control target
= control target key end

     0   :  { %10 = vsyncpa [#allocation3], 0  ;;  %s487_s0 = inlined_call_operand.vmem [shape: f32[8,64], index: 0, kind: input, shape index: {}]   ;;  %s488_s1 = inlined_call_operand.hbm [shape: f32[64,128], index: 1, kind: input, shape index: {}]   ;;  %s489_s2 = inlined_call_operand.vmem [shape: f32[1,128], index: 2, kind: input, shape index: {}]   ;;  %s490_s3 = inlined_call_operand.hbm [shape: f32[128,128], index: 3, kind: input, shape index: {}]   ;;  %s491_s4 = inlined_call_operand.vmem [shape: f32[1,128], index: 4, kind: input, shape index: {}]   ;;  %s492_s5 = inlined_call_operand.vmem [shape: f32[8,128], index: 5, kind: output, shape index: {}]  }
   0x1   :  { %11 = vsyncpa [#allocation5], 0  ;;  %s414_s18 = smov [#allocation2]   ;;  %s366_s22 = scalar_lea.hbm %s488_s1, 1024 }
   0x2   :  { %s19_s19 = sshll.u32 %s414_s18, 4  ;;  %p367_p0 = scmp.ne.s32.totalorder %s488_s1, %s366_s22  ;;  %s20_s19 = int_to_ptr.vmem [resolvable:$true] %s19_s19 }
   0x3   :  { %p370_p1 = scmp.lt.u32.totalorder %s366_s22, %s488_s1 }
   0x5   :  { %p372_p2 = pnand %p370_p1, %p367_p0 }
   0x7   :  { %375 = shalt.err (!%p372_p2)
}
   0x8   :  { %s376_s27 = scalar_lea.vmem %s20_s19, 1024  ;;  %p381_p4 = scmp.lt.s32.totalorder %s20_s19, %s20_s19 }
   0x9   :  { %p377_p3 = scmp.ne.s32.totalorder %s20_s19, %s376_s27  ;;  %p382_p5 = scmp.lt.s32.totalorder %s376_s27, %s376_s27 }
   0xb   :  { %p383_p6 = por %p382_p5, %p381_p4 }
   0xd   :  { %p384_p7 = pnand %p383_p6, %p377_p3 }
   0xf   :  { %387 = shalt.err (!%p384_p7)
}
  0x10   :  { %s415_s28 = smov 128   ;;  %s416_s29 = smov 8  }
  0x11   :  { %25 = dma.hbm_to_vmem [thread:$0]  %s488_s1, 1024, %s20_s19, [#allocation3], %s415_s28, %s415_s28, %s416_s29  }
  0x12   :  { %s417_s7 = smov [#allocation4]   ;;  %s388_s11 = scalar_lea.hbm %s490_s3, 2048 }
  0x13   :  { %s33_s8 = sshll.u32 %s417_s7, 4  ;;  %p389_p8 = scmp.ne.s32.totalorder %s490_s3, %s388_s11  ;;  %s34_s8 = int_to_ptr.vmem [resolvable:$true] %s33_s8 }
  0x14   :  { %p392_p9 = scmp.lt.u32.totalorder %s388_s11, %s490_s3 }
  0x16   :  { %p394_p10 = pnand %p392_p9, %p389_p8 }
  0x18   :  { %397 = shalt.err (!%p394_p10)
}
  0x19   :  { %s398_s16 = scalar_lea.vmem %s34_s8, 2048  ;;  %p403_p12 = scmp.lt.s32.totalorder %s34_s8, %s34_s8 }
  0x1a   :  { %p399_p11 = scmp.ne.s32.totalorder %s34_s8, %s398_s16  ;;  %p404_p13 = scmp.lt.s32.totalorder %s398_s16, %s398_s16 }
  0x1c   :  { %p405_p0 = por %p404_p13, %p403_p12 }
  0x1e   :  { %p406_p1 = pnand %p405_p0, %p399_p11 }
  0x20   :  { %409 = shalt.err (!%p406_p1)
}
  0x21   :  { %39 = dma.hbm_to_vmem [thread:$0]  %s490_s3, 2048, %s34_s8, [#allocation5], %s415_s28, %s415_s28, %s416_s29  }
  0x22   :  { %410 = dma.done.wait [#allocation3], 1024  }
  0x23   :  { %411 = vsyncadd [#allocation3], 4294966272 }
  0x24   :  { %412 = dma.done.wait [#allocation5], 2048  }
  0x25   :  { %413 = vsyncadd [#allocation5], 4294965248  ;;  %v418_v0 = vmov 0.0|0.0   ;;  %vm419_vm0 = vmmov 0   ;;  %v420_v1 = vmov 0.0   ;;  %v49_v2 = vld [vmem:[#allocation2] sm:$0xff] }
  0x26   :  { %323 = vmatprep.subr.bf16.mxu0 %v418_v0  ;;  %285 = vmatprep.mubr.msk.f32.mxu0 %vm419_vm0, %v420_v1  ;;  %v50_v3 = vld [vmem:[#allocation2 + $0x8] sm:$0xff]  ;;  %v51_v4 = vld [vmem:[#allocation2 + $0x10] sm:$0xff]  ;;  %v52_v6 = vld [vmem:[#allocation2 + $0x18] sm:$0xff]  ;;  %vm64_vm1 = vcmask 523264  }
  0x27   :  { %335 = vmatprep.subr.bf16.mxu1 %v418_v0  ;;  %320 = vmatprep.mubr.msk.f32.mxu1 %vm419_vm0, %v420_v1  ;;  %v324_v5 = vpack.c.bf16 %v50_v3, %v49_v2  ;;  %v327_v7 = vpack.c.bf16 %v52_v6, %v51_v4  ;;  %v139_v8 = vld [vmem:[#allocation4] sm:$0xff]  ;;  %v140_v9 = vld [vmem:[#allocation4 + $0x8] sm:$0xff]  ;;  %v141_v10 = vld [vmem:[#allocation4 + $0x10] sm:$0xff] }
  0x28   :  { %v53_v11 = vld [vmem:[#allocation2 + $0x20] sm:$0xff]  ;;  %v54_v12 = vld [vmem:[#allocation2 + $0x28] sm:$0xff]  ;;  %v336_v13 = vpack.c.bf16 %v140_v9, %v139_v8  ;;  %v142_v14 = vld [vmem:[#allocation4 + $0x18] sm:$0xff] }
  0x29   :  { %325 = vmatpush3.bf16.msra.mxu0 %v324_v5  ;;  %v339_v15 = vpack.c.bf16 %v142_v14, %v141_v10  ;;  %v330_v16 = vpack.c.bf16 %v54_v12, %v53_v11  ;;  %v143_v17 = vld [vmem:[#allocation4 + $0x20] sm:$0xff]  ;;  %v144_v18 = vld [vmem:[#allocation4 + $0x28] sm:$0xff]  ;;  %v55_v19 = vld [vmem:[#allocation2 + $0x30] sm:$0xff] }
  0x2a   :  { %326 = vmatprep.subr.bf16.mxu0 %v418_v0  ;;  %337 = vmatpush3.bf16.msra.mxu1 %v336_v13  ;;  %v56_v20 = vld [vmem:[#allocation2 + $0x38] sm:$0xff]  ;;  %v342_v21 = vpack.c.bf16 %v144_v18, %v143_v17  ;;  %v145_v23 = vld [vmem:[#allocation4 + $0x30] sm:$0xff]  ;;  %v48_v26 = vld [vmem:[%s487_s0] sm:$0xff] }
  0x2b   :  { %338 = vmatprep.subr.bf16.mxu1 %v418_v0  ;;  %v333_v22 = vpack.c.bf16 %v56_v20, %v55_v19  ;;  %v146_v24 = vld [vmem:[#allocation4 + $0x38] sm:$0xff]  ;;  %v147_v27 = vld [vmem:[#allocation4 + $0x40] sm:$0xff]  ;;  %v148_v28 = vld [vmem:[#allocation4 + $0x48] sm:$0xff] }
  0x2c   :  { %v345_v25 = vpack.c.bf16 %v146_v24, %v145_v23  ;;  %v348_v29 = vpack.c.bf16 %v148_v28, %v147_v27  ;;  %v149_v30 = vld [vmem:[#allocation4 + $0x50] sm:$0xff]  ;;  %v150_v31 = vld [vmem:[#allocation4 + $0x58] sm:$0xff]  ;;  %v151_v33 = vld [vmem:[#allocation4 + $0x60] sm:$0xff] }
  0x2d   :  { %328 = vmatpush3.bf16.msra.mxu0 %v327_v7  ;;  %v351_v32 = vpack.c.bf16 %v150_v31, %v149_v30  ;;  %v152_v34 = vld [vmem:[#allocation4 + $0x68] sm:$0xff]  ;;  %v153_v36 = vld [vmem:[#allocation4 + $0x70] sm:$0xff]  ;;  %v154_v37 = vld [vmem:[#allocation4 + $0x78] sm:$0xff] }
  0x2e   :  { %329 = vmatprep.subr.bf16.mxu0 %v418_v0  ;;  %340 = vmatpush3.bf16.msra.mxu1 %v339_v15  ;;  %v354_v35 = vpack.c.bf16 %v152_v34, %v151_v33  ;;  %v357_v38 = vpack.c.bf16 %v154_v37, %v153_v36  ;;  %v240_v39 = vld [vmem:[%s489_s2] ss:$0 sm:$0xff] }
  0x2f   :  { %341 = vmatprep.subr.bf16.mxu1 %v418_v0  ;;  %v242_v44 = vld [vmem:[%s491_s4] ss:$0 sm:$0xff] }
  0x31   :  { %331 = vmatpush3.bf16.msra.mxu0 %v330_v16 }
  0x32   :  { %332 = vmatprep.subr.bf16.mxu0 %v418_v0  ;;  %343 = vmatpush3.bf16.msra.mxu1 %v342_v21 }
  0x33   :  { %344 = vmatprep.subr.bf16.mxu1 %v418_v0 }
  0x35   :  { %334 = vmatpush3.bf16.msra.mxu0 %v333_v22 }
  0x36   :  { %346 = vmatpush3.bf16.msra.mxu1 %v345_v25 }
  0x37   :  { %347 = vmatprep.subr.bf16.mxu1 %v418_v0 }
  0x38   :  { %286 = vmatmul.mubr.msk.f32.vlgmr.msra.gmra.mrb[0].mxu0 %vm64_vm1, %v48_v26 }
  0x3a   :  { %349 = vmatpush3.bf16.msra.mxu1 %v348_v29 }
  0x3b   :  { %350 = vmatprep.subr.bf16.mxu1 %v418_v0 }
  0x3e   :  { %352 = vmatpush3.bf16.msra.mxu1 %v351_v32 }
  0x3f   :  { %353 = vmatprep.subr.bf16.mxu1 %v418_v0 }
  0x42   :  { %355 = vmatpush3.bf16.msra.mxu1 %v354_v35 }
  0x43   :  { %356 = vmatprep.subr.bf16.mxu1 %v418_v0 }
  0x46   :  { %358 = vmatpush3.bf16.msra.mxu1 %v357_v38 }
 0x10b   :  { %v134_v40 = vpop.f32.mrb[0].mxu0 }
 0x10c   :  { %v135_v41 = vadd.f32 %v240_v39, %v134_v40  ;;  %v287_v42 = vpop.f32.mrb[1].mxu0 }
 0x10e   :  { %v138_v43 = vmax.f32 %v135_v41, 0.0 }
 0x110   :  { %321 = vmatmul.mubr.f32.vlgmr.msra.gmra.mrb[0].mxu1 %v138_v43 }
 0x1e3   :  { %v228_v45 = vpop.f32.mrb[0].mxu1 }
 0x1e4   :  { %v229_v46 = vadd.f32 %v242_v44, %v228_v45  ;;  %v322_v47 = vpop.f32.mrb[1].mxu1 }
 0x1e6   :  { %v232_v48 = vmax.f32 %v229_v46, 0.0 }
 0x1e8   :  { %233 = vst [vmem:[%s492_s5] sm:$0xff] %v232_v48 }
 0x1e9   :  { %238 = vsyncpa [#allocation3], 1 }
 0x1ea   :  { %239 = vsyncpa [#allocation5], 1 }

</bundles_post_ra>
